<compile_context>
chip_gen: v6e
topology: v6e:2x2x1
jax: 0.10.0
libtpu: 0.0.40
codegen_flags: <defaults>
</compile_context>

<pallas_src>
import jax
import jax.numpy as jnp
from jax.experimental import pallas as pl
from jax.experimental.pallas import tpu as pltpu


def _round_up(n, m):
    return ((n + m - 1) // m) * m


def _binary_head_kernel(x_ref, w_ref, b_ref, o_ref):
    # x_ref: (TB, D)   w_ref: (D, 1)   b_ref: (1, 1) f32   o_ref: (TB, 1)
    y = jnp.dot(x_ref[...], w_ref[...], preferred_element_type=jnp.float32)
    o_ref[...] = (y + b_ref[...]).astype(o_ref.dtype)


def binary_head(x, weight, bias, padding_mask=None, *, block_rows=256):
    """BinaryHead forward.

    x:      [..., D]   (any number of leading dims)
    weight: [1, D]     (torch nn.Linear layout: [out_features, in_features])
    bias:   [1]
    Returns [..., 1].
    """
    if padding_mask is not None:
        # TODO(synk): x[~padding_mask, :] yields a data-dependent shape; there
        # is no static-shape Pallas equivalent — caller must pre-compact rows.
        raise NotImplementedError("padding_mask row selection not supported")

    lead = x.shape[:-1]
    d = x.shape[-1]
    xf = x.reshape(-1, d)                       # [N, D] — free row-major reshape
    n = xf.shape[0]

    tb = _round_up(min(block_rows, n), 8)       # rows per grid step (sublane x8)
    n_pad = _round_up(n, tb)
    if n_pad != n:
        xf = jnp.pad(xf, ((0, n_pad - n), (0, 0)))

    w_col = weight.reshape(d, 1)                # [D, 1], resident in VMEM
    b2 = bias.reshape(1, 1).astype(jnp.float32)

    out = pl.pallas_call(
        _binary_head_kernel,
        out_shape=jax.ShapeDtypeStruct((n_pad, 1), x.dtype),
        grid_spec=pltpu.PrefetchScalarGridSpec(
            num_scalar_prefetch=0,
            grid=(n_pad // tb,),
            in_specs=[
                pl.BlockSpec((tb, d), lambda i: (i, 0)),    # streamed row tiles
                pl.BlockSpec((d, 1), lambda i: (0, 0)),     # resident weight
                pl.BlockSpec((1, 1), lambda i: (0, 0)),     # resident bias
            ],
            out_specs=pl.BlockSpec((tb, 1), lambda i: (i, 0)),
        ),
        compiler_params=pltpu.CompilerParams(
            # Row tiles are independent -> megacore-shardable on v7x,
            # harmless on single-TC v5e/v6e.
            dimension_semantics=("parallel",),
            vmem_limit_bytes=32 * 1024 * 1024,
        ),
    )(xf, w_col, b2)

    return out[:n].reshape(lead + (1,))


def _reference(x, weight, bias):
    # Pure-VPU f32 reference (exact f32 accumulation, no MXU precision quirks).
    xf = x.astype(jnp.float32)
    w = weight.astype(jnp.float32)[0]           # [D]
    return jnp.sum(xf * w, axis=-1, keepdims=True) + bias.astype(jnp.float32)


if __name__ == "__main__":
    # Small shapes consistent with the module: [batch, seq, embed_dim] -> [..., 1]
    B, T, D = 2, 128, 256

    key = jax.random.PRNGKey(0)
    kx, kw, kb = jax.random.split(key, 3)
    x = jax.random.normal(kx, (B, T, D), dtype=jnp.float32)
    weight = jax.random.normal(kw, (1, D), dtype=jnp.float32) * 0.05
    bias = jax.random.normal(kb, (1,), dtype=jnp.float32) * 0.01

    out = binary_head(x, weight, bias, block_rows=128)   # N=256 -> grid=(2,)
    out = jax.block_until_ready(out)

    ref = _reference(x, weight, bias)
    assert out.shape == (B, T, 1)
    assert jnp.allclose(out, ref, atol=1e-4, rtol=1e-4), "mismatch vs reference"

    print("KERNEL_OK")
</pallas_src>

<mosaic_0001>
module attributes {stable_mosaic.version = 11 : i64} {
  func.func @_binary_head_kernel(%arg0: i32, %arg1: memref<128x256xf32, #tpu.memory_space<vmem>>, %arg2: memref<256x1xf32, #tpu.memory_space<vmem>>, %arg3: memref<1x1xf32, #tpu.memory_space<vmem>>, %arg4: memref<128x1xf32, #tpu.memory_space<vmem>>) attributes {dimension_semantics = [#tpu.dimension_semantics<parallel>], iteration_bounds = array<i64: 2>, scalar_prefetch = 0 : i64, scratch_operands = 0 : i64, tpu.core_type = #tpu.core_type<tc>, window_params = [{transform_indices = @transform_0, window_bounds = array<i64: 128, 256>}, {pipeline_mode = #tpu.pipeline_mode<synchronous>, transform_indices = @transform_1, window_bounds = array<i64: 256, 1>}, {pipeline_mode = #tpu.pipeline_mode<synchronous>, transform_indices = @transform_2, window_bounds = array<i64: 1, 1>}, {transform_indices = @transform_3, window_bounds = array<i64: 128, 1>}]} {
    %c0 = arith.constant 0 : index
    %c0_0 = arith.constant 0 : index
    %0 = vector.load %arg1[%c0, %c0_0] : memref<128x256xf32, #tpu.memory_space<vmem>>, vector<128x256xf32>
    %c0_1 = arith.constant 0 : index
    %c0_2 = arith.constant 0 : index
    %1 = vector.load %arg2[%c0_1, %c0_2] : memref<256x1xf32, #tpu.memory_space<vmem>>, vector<256x1xf32>
    %cst = arith.constant dense<0.000000e+00> : vector<128x1xf32>
    %2 = tpu.matmul %0, %1, %cst {dimension_numbers = #tpu.dot_dimension_numbers<[1], [0], [0], [1], [0, 0, 1, 1], [], []>} : vector<128x256xf32>, vector<256x1xf32>, vector<128x1xf32> -> vector<128x1xf32>
    %c0_3 = arith.constant 0 : index
    %c0_4 = arith.constant 0 : index
    %3 = vector.load %arg3[%c0_3, %c0_4] : memref<1x1xf32, #tpu.memory_space<vmem>>, vector<1x1xf32>
    %4 = vector.broadcast %3 : vector<1x1xf32> to vector<128x1xf32>
    %5 = arith.addf %2, %4 : vector<128x1xf32>
    %c0_5 = arith.constant 0 : index
    %c0_6 = arith.constant 0 : index
    %6 = vector.load %arg4[%c0_5, %c0_6] : memref<128x1xf32, #tpu.memory_space<vmem>>, vector<128x1xf32>
    tpu.vector_store %arg4[%c0_5, %c0_6], %5 {strides = array<i32>} : memref<128x1xf32, #tpu.memory_space<vmem>>, vector<128x1xf32>,
    return
  }
  func.func @transform_0(%arg0: i32) -> (i32, i32) {
    %c0_i32 = arith.constant 0 : i32
    %c0_i32_0 = arith.constant 0 : i32
    return %arg0, %c0_i32 : i32, i32
  }
  func.func @transform_1(%arg0: i32) -> (i32, i32) {
    %c0_i32 = arith.constant 0 : i32
    %c0_i32_0 = arith.constant 0 : i32
    %c0_i32_1 = arith.constant 0 : i32
    return %c0_i32, %c0_i32_0 : i32, i32
  }
  func.func @transform_2(%arg0: i32) -> (i32, i32) {
    %c0_i32 = arith.constant 0 : i32
    %c0_i32_0 = arith.constant 0 : i32
    %c0_i32_1 = arith.constant 0 : i32
    return %c0_i32, %c0_i32_0 : i32, i32
  }
  func.func @transform_3(%arg0: i32) -> (i32, i32) {
    %c0_i32 = arith.constant 0 : i32
    %c0_i32_0 = arith.constant 0 : i32
    return %arg0, %c0_i32 : i32, i32
  }
}

</mosaic_0001>

<bundles_post_ra>
// kernel: tpu_custom_call.1
= control target key start
LH: loop header
LB: loop body
LE: loop exit
PB: predicated region body
PF: predicated region fallthrough
CT: control target
= control target key end

     0   :  { %s1038_s0 = inlined_call_operand.hbm [shape: f32[256,256], index: 0, kind: input, shape index: {}]   ;;  %s1039_s1 = inlined_call_operand.vmem [shape: f32[256,1], index: 1, kind: input, shape index: {}]   ;;  %s1040_s2 = inlined_call_operand.<no memory space> [shape: f32[1,1], index: 2, kind: input, shape index: {}]   ;;  %s1041_s3 = inlined_call_operand.vmem [shape: f32[256,1], index: 3, kind: output, shape index: {}]  }
   0x1   :  { %v8_v0 = vstv %s1040_s2 }
   0x2   :  { %9 = vst [vmem:[#allocation2] sm:$0x1] %v8_v0 }
   0x3   :  { %10 = vsyncpa [#allocation4], 0 }
   0x4   :  { %12 = vsyncpa [#allocation4 + $0x1], 0  ;;  %s756_s14 = smov 0   ;;  %s758_s15 = smov 0  }
   0x5   :  { %s760_s16 = smov 0   ;;  %s762_s17 = smov 0  }
   0x6 LB: > { %s496_s2 = sadd.s32 4294967295, %s728_s17   ;;  %s776_s18 = sadd.s32 1, %s728_s17   ;;  %s728_s17 = sphi %s762_s17, %s1050_s17   ;;  %s724_s16 = sphi %s760_s16, %s1049_s16   ;;  %s720_s15 = sphi %s758_s15, %s1048_s15   ;;  %s716_s14 = sphi %s756_s14, %s1047_s14  }
   0x7   : > { %s22_s19 = ssub.s32 %s728_s17, %s776_s18  ;;  %s25_s20 = sadd.s32 1, %s724_s16 }
   0x8   : > { %p23_p0 = scmp.eq.s32.totalorder %s22_s19, 0  ;;  %p32_p1 = scmp.ne.s32.totalorder %s724_s16, %s720_s15 }
   0x9   : > { %p33_p2 = scmp.eq.s32.totalorder %s728_s17, 0  ;;  %p38_p3 = scmp.ne.s32.totalorder %s720_s15, %s716_s14 }
   0xa   : > { %s786_s21 = scalar_select %p23_p0, %s724_s16, %s25_s20  }
   0xb   : > { %p34_p4 = por %p33_p2, %p32_p1  ;;  %p39_p5 = scmp.eq.s32.totalorder %s496_s2, 0 }
   0xc   : > { %p631_p6 = scmp.lt.s32.totalorder %s728_s17, 2  ;;  %s136_s23 = sand.u32 1, %s724_s16  }
   0xd   : > { %p791_p7 = por %p39_p5, %p38_p3  ;;  %s500_s24 = sshll.u32 %s136_s23, 8 }
   0xe   : > { %s512_s25 = sshll.u32 %s728_s17, 12  ;;  %s140_s29 = scalar_lea.vmem [#allocation3], %s500_s24 }
   0xf   : > { %s1043_s22 = scalar_select %p791_p7, 1, 0 }
  0x10   : > { %s800_s28 = scalar_lea.hbm %s1038_s0, %s512_s25  ;;  %s148_s30 = sshll.u32 %s140_s29, 4  ;;  %s802_s30 = int_to_ptr.vmem [resolvable:$true] %s148_s30 }
  0x11   : > { %p804_p8 = pnand %p631_p6, %p34_p4  ;;  %s809_s5 = scalar_lea.sflag [#allocation4], %s136_s23 }
  0x12   : > { %s666_s6 = scalar_lea.hbm %s800_s28, 4096  ;;  %s671_s9 = scalar_lea.hbm %s1038_s0, 8192 }
  0x13   : > { %p667_p10 = scmp.ne.s32.totalorder %s800_s28, %s666_s6  ;;  %p668_p11 = pneg %p804_p8 }
  0x14   : > { %p672_p0 = scmp.lt.s32.totalorder %s800_s28, %s1038_s0  ;;  %p673_p1 = scmp.lt.s32.totalorder %s671_s9, %s666_s6 }
  0x15   : > { %p669_p12 = pnand %p668_p11, %p667_p10 }
  0x16   : > { %p674_p2 = por %p673_p1, %p672_p0 }
  0x17   : > { %p670_p13 = pneg %p669_p12 }
  0x19   : > { %p675_p3 = pnand %p674_p2, %p670_p13 }
  0x1b   : > { %678 = shalt.err (!%p675_p3)
}
  0x1c   : > { %s679_s12 = scalar_lea.vmem %s802_s30, 4096  ;;  %s730_s13 = smov [#allocation3]  }
  0x1d   : > { %p680_p4 = scmp.ne.s32.totalorder %s802_s30, %s679_s12  ;;  %s684_s14 = sshll.u32 %s730_s13, 4  ;;  %s685_s14 = int_to_ptr.vmem [resolvable:$false] %s684_s14 }
  0x1e   : > { %s686_s19 = scalar_lea.vmem %s685_s14, 8192  ;;  %p687_p10 = scmp.lt.s32.totalorder %s802_s30, %s685_s14 }
  0x1f   : > { %p682_p5 = pnand %p680_p4, %p668_p11  ;;  %p688_p12 = scmp.lt.s32.totalorder %s686_s19, %s679_s12 }
  0x21   : > { %p683_p6 = pneg %p682_p5  ;;  %p689_p9 = por %p688_p12, %p687_p10 }
  0x23   : > { %p690_p7 = pnand %p689_p9, %p683_p6 }
  0x25   : > { %693 = shalt.err (!%p690_p7)
}
  0x26   : > { %s731_s20 = smov 256   ;;  %s732_s23 = smov 16  }
  0x27   : > { %630 = dma.hbm_to_vmem [thread:$0]  (!%p804_p8), %s800_s28, 4096, %s802_s30, %s809_s5, %s731_s20, %s731_s20, %s732_s23  }
  0x28   : > { %p156_p11 = scmp.lt.s32.totalorder %s728_s17, 3  ;;  %p1045_p13 = scmp.ge.s32.totalorder %s728_s17, 1 }
  0x2a   : > { %p157_p0 = pnand %p1045_p13, %p156_p11 }
  0x2b   : > { %s162_s24 = sand.u32 (!%p157_p0), 1, %s720_s15   ;;  %p1046_p7 = scmp.ne.s32.totalorder (!%p157_p0), %s1043_s22, 0 }
  0x2c   : > { %160 = sbr.rel (%p157_p0) target bundleno = 312 (0x138), region = 32  ;;  %s505_s25 = sshll.u32 (!%p157_p0), %s162_s24, 8 }
  0x2d   : > { %s163_s26 = scalar_lea.sflag (!%p157_p0), [#allocation4], %s162_s24  ;;  %s834_s27 = scalar_lea.vmem (!%p157_p0), [#allocation3], %s505_s25 }
  0x31   : > { %711 = dma.done.wait (%p1046_p7), %s163_s26, 4096  }
  0x32   : > { %713 = vsyncadd (%p1046_p7), %s163_s26, 4294963200  ;;  %v259_v1 = vld [vmem:[%s1039_s1 + $0xf8] sm:$0xff]  ;;  %v258_v3 = vld [vmem:[%s1039_s1 + $0xf0] sm:$0xff]  ;;  %s506_s6 = sshll.u32 %s496_s2, 4  ;;  %vm412_vm0 = vcmask 7168  }
  0x33   : > { %v243_v2 = vld [vmem:[%s1039_s1 + $0x78] sm:$0xff]  ;;  %513 = vmatprep.subr.mxu0 %v259_v1  ;;  %593 = vmatprep.subr.mxu1 %v259_v1  ;;  %v242_v4 = vld [vmem:[%s1039_s1 + $0x70] sm:$0xff]  ;;  %v257_v5 = vld [vmem:[%s1039_s1 + $0xe8] sm:$0xff]  ;;  %p191_p8 = scmp.lt.s32.totalorder %s506_s6, 31 }
  0x34   : > { %514 = vmatpush3.msra.mxu0 %v243_v2  ;;  %609 = vmatpush3.msra.mxu1 %v243_v2  ;;  %v241_v6 = vld [vmem:[%s1039_s1 + $0x68] sm:$0xff]  ;;  %v256_v7 = vld [vmem:[%s1039_s1 + $0xe0] sm:$0xff]  ;;  %v255_v9 = vld [vmem:[%s1039_s1 + $0xd8] sm:$0xff] }
  0x35   : > { %515 = vmatprep.subr.mxu0 %v258_v3  ;;  %594 = vmatprep.subr.mxu1 %v258_v3  ;;  %v240_v8 = vld [vmem:[%s1039_s1 + $0x60] sm:$0xff]  ;;  %v239_v10 = vld [vmem:[%s1039_s1 + $0x58] sm:$0xff]  ;;  %v254_v11 = vld [vmem:[%s1039_s1 + $0xd0] sm:$0xff]  ;;  %s1052_s6 = smov (!%p191_p8, %s506_s6), 31 }
  0x36   : > { %516 = vmatpush3.msra.mxu0 %v242_v4  ;;  %610 = vmatpush3.msra.mxu1 %v242_v4  ;;  %v238_v12 = vld [vmem:[%s1039_s1 + $0x50] sm:$0xff]  ;;  %v253_v13 = vld [vmem:[%s1039_s1 + $0xc8] sm:$0xff]  ;;  %v252_v15 = vld [vmem:[%s1039_s1 + $0xc0] sm:$0xff]  ;;  %s507_s28 = sshll.u32 %s1052_s6, 3 }
  0x37   : > { %517 = vmatprep.subr.mxu0 %v257_v5  ;;  %595 = vmatprep.subr.mxu1 %v257_v5  ;;  %v237_v14 = vld [vmem:[%s1039_s1 + $0x48] sm:$0xff]  ;;  %v236_v16 = vld [vmem:[%s1039_s1 + $0x40] sm:$0xff]  ;;  %v251_v17 = vld [vmem:[%s1039_s1 + $0xb8] sm:$0xff]  ;;  %s975_s5 = scalar_lea.vmem %s1041_s3, %s507_s28 }
  0x38   : > { %518 = vmatpush3.msra.mxu0 %v241_v6  ;;  %611 = vmatpush3.msra.mxu1 %v241_v6  ;;  %v235_v18 = vld [vmem:[%s1039_s1 + $0x38] sm:$0xff]  ;;  %v250_v19 = vld [vmem:[%s1039_s1 + $0xb0] sm:$0xff]  ;;  %v249_v21 = vld [vmem:[%s1039_s1 + $0xa8] sm:$0xff] }
  0x39   : > { %519 = vmatprep.subr.mxu0 %v256_v7  ;;  %596 = vmatprep.subr.mxu1 %v256_v7  ;;  %v234_v20 = vld [vmem:[%s1039_s1 + $0x30] sm:$0xff]  ;;  %v233_v22 = vld [vmem:[%s1039_s1 + $0x28] sm:$0xff]  ;;  %v248_v23 = vld [vmem:[%s1039_s1 + $0xa0] sm:$0xff] }
  0x3a   : > { %520 = vmatpush3.msra.mxu0 %v240_v8  ;;  %612 = vmatpush3.msra.mxu1 %v240_v8  ;;  %v232_v24 = vld [vmem:[%s1039_s1 + $0x20] sm:$0xff]  ;;  %v247_v25 = vld [vmem:[%s1039_s1 + $0x98] sm:$0xff]  ;;  %v246_v27 = vld [vmem:[%s1039_s1 + $0x90] sm:$0xff] }
  0x3b   : > { %521 = vmatprep.subr.mxu0 %v255_v9  ;;  %597 = vmatprep.subr.mxu1 %v255_v9  ;;  %v231_v26 = vld [vmem:[%s1039_s1 + $0x18] sm:$0xff]  ;;  %v230_v28 = vld [vmem:[%s1039_s1 + $0x10] sm:$0xff]  ;;  %v245_v29 = vld [vmem:[%s1039_s1 + $0x88] sm:$0xff] }
  0x3c   : > { %522 = vmatpush3.msra.mxu0 %v239_v10  ;;  %613 = vmatpush3.msra.mxu1 %v239_v10  ;;  %v229_v30 = vld [vmem:[%s1039_s1 + $0x8] sm:$0xff]  ;;  %v244_v31 = vld [vmem:[%s1039_s1 + $0x80] sm:$0xff]  ;;  %v198_v39 = vld [vmem:[%s834_s27 + $0x10] sm:$0xff] }
  0x3d   : > { %523 = vmatprep.subr.mxu0 %v254_v11  ;;  %598 = vmatprep.subr.mxu1 %v254_v11  ;;  %v228_v32 = vld [vmem:[%s1039_s1] sm:$0xff]  ;;  %v197_v33 = vld [vmem:[%s834_s27 + $0x8] sm:$0xff]  ;;  %v214_v40 = vld [vmem:[%s834_s27 + $0x90] sm:$0xff] }
  0x3e   : > { %524 = vmatpush3.msra.mxu0 %v238_v12  ;;  %614 = vmatpush3.msra.mxu1 %v238_v12  ;;  %v213_v34 = vld [vmem:[%s834_s27 + $0x88] sm:$0xff]  ;;  %v196_v35 = vld [vmem:[%s834_s27] sm:$0xff]  ;;  %v199_v37 = vld [vmem:[%s834_s27 + $0x18] sm:$0xff] }
  0x3f   : > { %525 = vmatprep.subr.mxu0 %v253_v13  ;;  %599 = vmatprep.subr.mxu1 %v253_v13  ;;  %v212_v36 = vld [vmem:[%s834_s27 + $0x80] sm:$0xff]  ;;  %v215_v38 = vld [vmem:[%s834_s27 + $0x98] sm:$0xff]  ;;  %v201_v41 = vld [vmem:[%s834_s27 + $0x28] sm:$0xff] }
  0x40   : > { %526 = vmatpush3.msra.mxu0 %v237_v14  ;;  %615 = vmatpush3.msra.mxu1 %v237_v14  ;;  %v217_v42 = vld [vmem:[%s834_s27 + $0xa8] sm:$0xff]  ;;  %v200_v43 = vld [vmem:[%s834_s27 + $0x20] sm:$0xff]  ;;  %v203_v45 = vld [vmem:[%s834_s27 + $0x38] sm:$0xff] }
  0x41   : > { %527 = vmatprep.subr.mxu0 %v252_v15  ;;  %600 = vmatprep.subr.mxu1 %v252_v15  ;;  %v216_v44 = vld [vmem:[%s834_s27 + $0xa0] sm:$0xff]  ;;  %v219_v46 = vld [vmem:[%s834_s27 + $0xb8] sm:$0xff]  ;;  %v202_v47 = vld [vmem:[%s834_s27 + $0x30] sm:$0xff] }
  0x42   : > { %528 = vmatpush3.msra.mxu0 %v236_v16  ;;  %616 = vmatpush3.msra.mxu1 %v236_v16  ;;  %v218_v48 = vld [vmem:[%s834_s27 + $0xb0] sm:$0xff]  ;;  %v205_v49 = vld [vmem:[%s834_s27 + $0x48] sm:$0xff]  ;;  %v204_v51 = vld [vmem:[%s834_s27 + $0x40] sm:$0xff] }
  0x43   : > { %529 = vmatprep.subr.mxu0 %v251_v17  ;;  %601 = vmatprep.subr.mxu1 %v251_v17  ;;  %v221_v50 = vld [vmem:[%s834_s27 + $0xc8] sm:$0xff]  ;;  %v220_v52 = vld [vmem:[%s834_s27 + $0xc0] sm:$0xff]  ;;  %v207_v53 = vld [vmem:[%s834_s27 + $0x58] sm:$0xff] }
  0x44   : > { %530 = vmatpush3.msra.mxu0 %v235_v18  ;;  %617 = vmatpush3.msra.mxu1 %v235_v18  ;;  %v223_v54 = vld [vmem:[%s834_s27 + $0xd8] sm:$0xff]  ;;  %v206_v55 = vld [vmem:[%s834_s27 + $0x50] sm:$0xff]  ;;  %v209_v57 = vld [vmem:[%s834_s27 + $0x68] sm:$0xff] }
  0x45   : > { %531 = vmatprep.subr.mxu0 %v250_v19  ;;  %602 = vmatprep.subr.mxu1 %v250_v19  ;;  %v222_v56 = vld [vmem:[%s834_s27 + $0xd0] sm:$0xff]  ;;  %v225_v58 = vld [vmem:[%s834_s27 + $0xe8] sm:$0xff]  ;;  %v208_v59 = vld [vmem:[%s834_s27 + $0x60] sm:$0xff] }
  0x46   : > { %532 = vmatpush3.msra.mxu0 %v234_v20  ;;  %618 = vmatpush3.msra.mxu1 %v234_v20  ;;  %v224_v60 = vld [vmem:[%s834_s27 + $0xe0] sm:$0xff]  ;;  %v211_v61 = vld [vmem:[%s834_s27 + $0x78] sm:$0xff]  ;;  %v210_v63 = vld [vmem:[%s834_s27 + $0x70] sm:$0xff] }
  0x47   : > { %533 = vmatprep.subr.mxu0 %v249_v21  ;;  %603 = vmatprep.subr.mxu1 %v249_v21  ;;  %v227_v62 = vld [vmem:[%s834_s27 + $0xf8] sm:$0xff]  ;;  %v226_v0 = vld [vmem:[%s834_s27 + $0xf0] sm:$0xff] }
  0x48   : > { %534 = vmatpush3.msra.mxu0 %v233_v22  ;;  %619 = vmatpush3.msra.mxu1 %v233_v22  ;;  %v970_v3 = vld [vmem:[#allocation2] ss:$0 sm:$0xff] }
  0x49   : > { %535 = vmatprep.subr.mxu0 %v248_v23  ;;  %604 = vmatprep.subr.mxu1 %v248_v23 }
  0x4a   : > { %536 = vmatpush3.msra.mxu0 %v232_v24  ;;  %620 = vmatpush3.msra.mxu1 %v232_v24 }
  0x4b   : > { %537 = vmatprep.subr.mxu0 %v247_v25  ;;  %605 = vmatprep.subr.mxu1 %v247_v25 }
  0x4c   : > { %538 = vmatpush3.msra.mxu0 %v231_v26  ;;  %621 = vmatpush3.msra.mxu1 %v231_v26 }
  0x4d   : > { %539 = vmatprep.subr.mxu0 %v246_v27  ;;  %606 = vmatprep.subr.mxu1 %v246_v27 }
  0x4e   : > { %540 = vmatpush3.msra.mxu0 %v230_v28  ;;  %622 = vmatpush3.msra.mxu1 %v230_v28 }
  0x4f   : > { %541 = vmatprep.subr.mxu0 %v245_v29  ;;  %607 = vmatprep.subr.mxu1 %v245_v29 }
  0x50   : > { %542 = vmatpush3.msra.mxu0 %v229_v30  ;;  %623 = vmatpush3.msra.mxu1 %v229_v30 }
  0x51   : > { %543 = vmatprep.subr.mxu0 %v244_v31  ;;  %608 = vmatprep.subr.mxu1 %v244_v31 }
  0x52   : > { %544 = vmatpush3.msra.mxu0 %v228_v32  ;;  %624 = vmatpush3.msra.mxu1 %v228_v32 }
  0x53   : > { %331 = vmatprep.mubr.f32.mxu0 %v197_v33  ;;  %371 = vmatprep.mubr.f32.mxu1 %v213_v34 }
  0x54   : > { %332 = vmatmul.mubr.f32.vlgmr.msra.gmra.mxu0 %v196_v35  ;;  %372 = vmatmul.mubr.f32.vlgmr.msra.gmra.mxu1 %v212_v36 }
  0x55   : > { %336 = vmatprep.mubr.f32.mxu0 %v199_v37  ;;  %376 = vmatprep.mubr.f32.mxu1 %v215_v38 }
  0x58   : > { %337 = vmatmul.mubr.f32.gmra.mxu0 %v198_v39  ;;  %377 = vmatmul.mubr.f32.gmra.mxu1 %v214_v40 }
  0x59   : > { %341 = vmatprep.mubr.f32.mxu0 %v201_v41  ;;  %381 = vmatprep.mubr.f32.mxu1 %v217_v42 }
  0x5c   : > { %342 = vmatmul.mubr.f32.gmra.mxu0 %v200_v43  ;;  %382 = vmatmul.mubr.f32.gmra.mxu1 %v216_v44 }
  0x5d   : > { %346 = vmatprep.mubr.f32.mxu0 %v203_v45  ;;  %386 = vmatprep.mubr.f32.mxu1 %v219_v46 }
  0x60   : > { %347 = vmatmul.mubr.f32.gmra.mxu0 %v202_v47  ;;  %387 = vmatmul.mubr.f32.gmra.mxu1 %v218_v48 }
  0x61   : > { %351 = vmatprep.mubr.f32.mxu0 %v205_v49  ;;  %391 = vmatprep.mubr.f32.mxu1 %v221_v50 }
  0x64   : > { %352 = vmatmul.mubr.f32.gmra.mxu0 %v204_v51  ;;  %392 = vmatmul.mubr.f32.gmra.mxu1 %v220_v52 }
  0x65   : > { %356 = vmatprep.mubr.f32.mxu0 %v207_v53  ;;  %396 = vmatprep.mubr.f32.mxu1 %v223_v54 }
  0x68   : > { %357 = vmatmul.mubr.f32.gmra.mxu0 %v206_v55  ;;  %397 = vmatmul.mubr.f32.gmra.mxu1 %v222_v56 }
  0x69   : > { %361 = vmatprep.mubr.f32.mxu0 %v209_v57  ;;  %401 = vmatprep.mubr.f32.mxu1 %v225_v58 }
  0x6c   : > { %362 = vmatmul.mubr.f32.gmra.mxu0 %v208_v59  ;;  %402 = vmatmul.mubr.f32.gmra.mxu1 %v224_v60 }
  0x6d   : > { %366 = vmatprep.mubr.f32.mxu0 %v211_v61  ;;  %406 = vmatprep.mubr.f32.mxu1 %v227_v62 }
  0x70   : > { %367 = vmatmul.mubr.f32.gmra.mxu0 %v210_v63  ;;  %407 = vmatmul.mubr.f32.gmra.mxu1 %v226_v0 }
 0x114   : > { %v545_v1 = vpop.f32.mrf.mxu0  ;;  %v569_v2 = vpop.f32.mrf.mxu1 }
 0x116   : > { %v546_v4 = vpop.f32.mrf.mxu0  ;;  %v570_v5 = vpop.f32.mrf.mxu1 }
 0x117   : > { %v547_v6 = vadd.f32 %v546_v4, %v545_v1  ;;  %v571_v7 = vadd.f32 %v570_v5, %v569_v2 }
 0x118   : > { %v548_v8 = vpop.f32.mrf.mxu0  ;;  %v572_v9 = vpop.f32.mrf.mxu1 }
 0x119   : > { %v334_v10 = vadd.f32 %v547_v6, %v970_v3  ;;  %v374_v11 = vadd.f32 %v571_v7, %v970_v3 }
 0x11a   : > { %v549_v12 = vpop.f32.mrf.mxu0  ;;  %v573_v13 = vpop.f32.mrf.mxu1 }
 0x11b   : > { %413 = vst.msk [vmem:[%s975_s5] sm:$0xff] %vm412_vm0, %v334_v10  ;;  %421 = vst.msk [vmem:[%s975_s5 + $0x40] sm:$0xff] %vm412_vm0, %v374_v11  ;;  %v550_v14 = vadd.f32 %v549_v12, %v548_v8  ;;  %v574_v15 = vadd.f32 %v573_v13, %v572_v9 }
 0x11c   : > { %v551_v16 = vpop.f32.mrf.mxu0  ;;  %v575_v17 = vpop.f32.mrf.mxu1 }
 0x11d   : > { %v339_v18 = vadd.f32 %v550_v14, %v970_v3  ;;  %v379_v19 = vadd.f32 %v574_v15, %v970_v3 }
 0x11e   : > { %v552_v20 = vpop.f32.mrf.mxu0  ;;  %v576_v21 = vpop.f32.mrf.mxu1 }
 0x11f   : > { %414 = vst.msk [vmem:[%s975_s5 + $0x8] sm:$0xff] %vm412_vm0, %v339_v18  ;;  %422 = vst.msk [vmem:[%s975_s5 + $0x48] sm:$0xff] %vm412_vm0, %v379_v19  ;;  %v553_v22 = vadd.f32 %v552_v20, %v551_v16  ;;  %v577_v23 = vadd.f32 %v576_v21, %v575_v17 }
 0x120   : > { %v554_v24 = vpop.f32.mrf.mxu0  ;;  %v578_v25 = vpop.f32.mrf.mxu1 }
 0x121   : > { %v344_v26 = vadd.f32 %v553_v22, %v970_v3  ;;  %v384_v27 = vadd.f32 %v577_v23, %v970_v3 }
 0x122   : > { %v555_v28 = vpop.f32.mrf.mxu0  ;;  %v579_v29 = vpop.f32.mrf.mxu1 }
 0x123   : > { %415 = vst.msk [vmem:[%s975_s5 + $0x10] sm:$0xff] %vm412_vm0, %v344_v26  ;;  %423 = vst.msk [vmem:[%s975_s5 + $0x50] sm:$0xff] %vm412_vm0, %v384_v27  ;;  %v556_v30 = vadd.f32 %v555_v28, %v554_v24  ;;  %v580_v31 = vadd.f32 %v579_v29, %v578_v25 }
 0x124   : > { %v557_v32 = vpop.f32.mrf.mxu0  ;;  %v581_v33 = vpop.f32.mrf.mxu1 }
 0x125   : > { %v349_v34 = vadd.f32 %v556_v30, %v970_v3  ;;  %v389_v35 = vadd.f32 %v580_v31, %v970_v3 }
 0x126   : > { %v558_v36 = vpop.f32.mrf.mxu0  ;;  %v582_v37 = vpop.f32.mrf.mxu1 }
 0x127   : > { %416 = vst.msk [vmem:[%s975_s5 + $0x18] sm:$0xff] %vm412_vm0, %v349_v34  ;;  %424 = vst.msk [vmem:[%s975_s5 + $0x58] sm:$0xff] %vm412_vm0, %v389_v35  ;;  %v559_v38 = vadd.f32 %v558_v36, %v557_v32  ;;  %v583_v39 = vadd.f32 %v582_v37, %v581_v33 }
 0x128   : > { %v560_v40 = vpop.f32.mrf.mxu0  ;;  %v584_v41 = vpop.f32.mrf.mxu1 }
 0x129   : > { %v354_v42 = vadd.f32 %v559_v38, %v970_v3  ;;  %v394_v43 = vadd.f32 %v583_v39, %v970_v3 }
 0x12a   : > { %v561_v44 = vpop.f32.mrf.mxu0  ;;  %v585_v45 = vpop.f32.mrf.mxu1 }
 0x12b   : > { %417 = vst.msk [vmem:[%s975_s5 + $0x20] sm:$0xff] %vm412_vm0, %v354_v42  ;;  %425 = vst.msk [vmem:[%s975_s5 + $0x60] sm:$0xff] %vm412_vm0, %v394_v43  ;;  %v562_v46 = vadd.f32 %v561_v44, %v560_v40  ;;  %v586_v47 = vadd.f32 %v585_v45, %v584_v41 }
 0x12c   : > { %v563_v48 = vpop.f32.mrf.mxu0  ;;  %v587_v49 = vpop.f32.mrf.mxu1 }
 0x12d   : > { %v359_v50 = vadd.f32 %v562_v46, %v970_v3  ;;  %v399_v51 = vadd.f32 %v586_v47, %v970_v3 }
 0x12e   : > { %v564_v52 = vpop.f32.mrf.mxu0  ;;  %v588_v53 = vpop.f32.mrf.mxu1 }
 0x12f   : > { %418 = vst.msk [vmem:[%s975_s5 + $0x28] sm:$0xff] %vm412_vm0, %v359_v50  ;;  %426 = vst.msk [vmem:[%s975_s5 + $0x68] sm:$0xff] %vm412_vm0, %v399_v51  ;;  %v565_v54 = vadd.f32 %v564_v52, %v563_v48  ;;  %v589_v55 = vadd.f32 %v588_v53, %v587_v49 }
 0x130   : > { %v566_v56 = vpop.f32.mrf.mxu0  ;;  %v590_v57 = vpop.f32.mrf.mxu1 }
 0x131   : > { %v364_v58 = vadd.f32 %v565_v54, %v970_v3  ;;  %v404_v59 = vadd.f32 %v589_v55, %v970_v3 }
 0x132   : > { %v567_v60 = vpop.f32.mrf.mxu0  ;;  %v591_v61 = vpop.f32.mrf.mxu1 }
 0x133   : > { %419 = vst.msk [vmem:[%s975_s5 + $0x30] sm:$0xff] %vm412_vm0, %v364_v58  ;;  %427 = vst.msk [vmem:[%s975_s5 + $0x70] sm:$0xff] %vm412_vm0, %v404_v59  ;;  %v568_v62 = vadd.f32 %v567_v60, %v566_v56  ;;  %v592_v63 = vadd.f32 %v591_v61, %v590_v57 }
 0x135   : > { %v369_v0 = vadd.f32 %v568_v62, %v970_v3  ;;  %v409_v1 = vadd.f32 %v592_v63, %v970_v3 }
 0x137   : > { %420 = vst.msk [vmem:[%s975_s5 + $0x38] sm:$0xff] %vm412_vm0, %v369_v0  ;;  %428 = vst.msk [vmem:[%s975_s5 + $0x78] sm:$0xff] %vm412_vm0, %v409_v1 }
 0x138 PF: > { %p15_p9 = scmp.ge.s32.totalorder %s776_s18, 4   ;;  %s1047_s14 = smov %s720_s15 }
 0x139   : > { %s1048_s15 = smov %s724_s16  ;;  %s1049_s16 = smov %s786_s21 }
 0x13a   : > { %s1050_s17 = smov %s776_s18  ;;  %17 = sbr.rel (!%p15_p9) target bundleno = 6 (0x6), region = 72 }
 0x13f   :  { %451 = vsyncpa [#allocation4], 1 }
 0x140   :  { %453 = vsyncpa [#allocation4 + $0x1], 1 }

</bundles_post_ra>
